<compile_context>
chip_gen: v7x
topology: tpu7x:2x2x1
jax: 0.10.0
libtpu: 0.0.40
codegen_flags: <defaults>
</compile_context>

<pallas_src>
import functools
import math

import jax
import jax.numpy as jnp
from jax import lax
from jax.experimental import pallas as pl
from jax.experimental.pallas import tpu as pltpu

EPS = 1e-5
_LANE = 128
_INV_SQRT2 = 1.0 / math.sqrt(2.0)


def _round_up(n, m):
    return ((n + m - 1) // m) * m


def _gelu_exact(h):
    # exact (erf-based) GELU, matching torch nn.GELU() default
    return 0.5 * h * (1.0 + lax.erf(h * _INV_SQRT2))


# --------------------------------------------------------------------------- kernel

def _attention_block_kernel(
    x_ref,        # (Bt, S, Ep)  f32, lane-padded (padded lanes are exactly zero)
    wqkv_ref,     # (Ep, 3*Ep)   matmul dtype; 1/sqrt(E) folded into the q slice
    bqkv_ref,     # (1, 3*Ep)    f32
    wo_ref,       # (Ep, Ep)     matmul dtype
    w1_ref,       # (Ep, Hp)     matmul dtype
    b1_ref,       # (1, Hp)      f32
    w2_ref,       # (Hp, Ep)     matmul dtype
    vecs_ref,     # (6, Ep)      f32 rows: [bo, ln1_g, ln1_b, b2, ln2_g, ln2_b]
    o_ref,        # (Bt, S, Ep)
    *,
    real_e,       # true embed dim (<= Ep)
):
    bt, s, ep = x_ref.shape
    rows = bt * s
    cdt = wqkv_ref.dtype            # MXU operand dtype (f32 or bf16); accumulate in f32
    f32 = jnp.float32

    # Lane mask: 1.0 on the real E lanes, 0.0 on padding (for LayerNorm statistics).
    lane = lax.broadcasted_iota(jnp.int32, (1, ep), 1)
    mask = (lane < real_e).astype(f32)
    inv_e = 1.0 / real_e

    vecs = vecs_ref[...].astype(f32)
    bo, g1, be1, b2, g2, be2 = (vecs[i:i + 1, :] for i in range(6))

    def layer_norm(y, gamma, beta):
        # mean/var over the real E lanes only (padded lanes of y are exactly 0).
        mu = jnp.sum(y * mask, axis=-1, keepdims=True) * inv_e
        d = y - mu
        dm = d * mask
        var = jnp.sum(dm * dm, axis=-1, keepdims=True) * inv_e
        # gamma/beta are zero on padded lanes -> padded lanes of the result stay 0.
        return d * lax.rsqrt(var + EPS) * gamma + beta

    x2 = x_ref[...].reshape(rows, ep)                        # f32 rows

    # --- fused Q/K/V projection: single (rows, Ep) x (Ep, 3Ep) MXU pass ---------
    qkv = (jnp.dot(x2.astype(cdt), wqkv_ref[...], preferred_element_type=f32)
           + bqkv_ref[...].astype(f32))
    q = qkv[:, 0 * ep:1 * ep].reshape(bt, s, ep)             # scale already folded in
    k = qkv[:, 1 * ep:2 * ep].reshape(bt, s, ep)
    v = qkv[:, 2 * ep:3 * ep].reshape(bt, s, ep)

    # --- single-head self-attention (contract last axes, no explicit transpose) --
    # TODO(synk): for large S add a KV grid axis with online (flash-style) softmax;
    #             the monolithic (S, S) score tile is fine at these shapes.
    scores = jnp.einsum("bqe,bke->bqk", q.astype(cdt), k.astype(cdt),
                        preferred_element_type=f32)
    m = jnp.max(scores, axis=-1, keepdims=True)
    p = jnp.exp(scores - m)
    denom = jnp.sum(p, axis=-1, keepdims=True)
    p = p * pl.reciprocal(denom, approx=True)                # divide on the EUP slot

    ctx = jnp.einsum("bqk,bke->bqe", p.astype(cdt), v.astype(cdt),
                     preferred_element_type=f32)
    ctx2 = ctx.reshape(rows, ep)

    attn_out = jnp.dot(ctx2.astype(cdt), wo_ref[...], preferred_element_type=f32) + bo

    # --- residual + LayerNorm 1 (dropout = identity in eval) --------------------
    y = layer_norm(x2 + attn_out, g1, be1)

    # --- feed-forward: Linear -> exact GELU -> Linear ---------------------------
    h = (jnp.dot(y.astype(cdt), w1_ref[...], preferred_element_type=f32)
         + b1_ref[...].astype(f32))
    h = _gelu_exact(h)
    ff = jnp.dot(h.astype(cdt), w2_ref[...], preferred_element_type=f32) + b2

    # --- residual + LayerNorm 2 --------------------------------------------------
    out = layer_norm(y + ff, g2, be2)
    o_ref[...] = out.reshape(bt, s, ep).astype(o_ref.dtype)


# --------------------------------------------------------------------------- wrapper

def _pick_batch_tile(batch, seq, target_rows=256):
    """Largest divisor of `batch` giving ~target_rows rows per grid step, while keeping
    >= 2 grid steps when batch > 1 (so the parallel axis can shard across v7x's 2 TCs)."""
    bt = max(1, min(batch, target_rows // max(seq, 1)))
    while batch % bt:
        bt -= 1
    if batch > 1 and batch // bt < 2:
        d = bt
        while d > 1 and (batch % d or batch // d < 2):
            d -= 1
        bt = d
    return bt


def improved_attention_block(x, prep):
    """x: (B, S, E) float32. prep: dict from prepare_params()."""
    B, S, E = x.shape
    Ep, Hp, H = prep["Ep"], prep["Hp"], prep["H"]
    assert E == prep["E"]

    # Lane-dense I/O: pad the embed dim up to a multiple of 128 lanes (layout plumbing).
    x_pad = x if Ep == E else jnp.pad(x, ((0, 0), (0, 0), (0, Ep - E)))

    Bt = _pick_batch_tile(B, S)
    grid = (B // Bt,)

    weights = (prep["wqkv_t"], prep["bqkv"], prep["wo_t"], prep["w1_t"],
               prep["b1"], prep["w2_t"], prep["vecs"])

    def _full(a):
        return pl.BlockSpec(a.shape, lambda b: (0,) * a.ndim)

    in_specs = [pl.BlockSpec((Bt, S, Ep), lambda b: (b, 0, 0))] + [_full(a) for a in weights]
    out_specs = pl.BlockSpec((Bt, S, Ep), lambda b: (b, 0, 0))

    flops = 2 * B * S * (3 * E * E + E * E + 2 * E * H) + 4 * B * S * S * E
    transcendentals = B * S * S + B * S * H          # softmax exp + GELU erf
    bytes_accessed = int(x_pad.nbytes) + B * S * Ep * 4 + sum(int(w.nbytes) for w in weights)

    out = pl.pallas_call(
        functools.partial(_attention_block_kernel, real_e=E),
        out_shape=jax.ShapeDtypeStruct((B, S, Ep), x.dtype),
        grid_spec=pltpu.PrefetchScalarGridSpec(
            num_scalar_prefetch=0,
            grid=grid,
            in_specs=in_specs,
            out_specs=out_specs,
        ),
        compiler_params=pltpu.CompilerParams(
            dimension_semantics=("parallel",),
            vmem_limit_bytes=32 * 1024 * 1024,
        ),
        cost_estimate=pl.CostEstimate(
            flops=flops, transcendentals=transcendentals, bytes_accessed=bytes_accessed),
    )(x_pad, *weights)

    return out[..., :E] if Ep != E else out


# --------------------------------------------------------------------------- params

def prepare_params(raw, matmul_dtype=jnp.float32):
    """Fuse / transpose / lane-pad torch-layout parameters for the kernel.

    matmul_dtype=jnp.bfloat16 uses the bf16-native MXU (v6e/v7x) and halves weight
    HBM->VMEM traffic; biases, LN params and all VPU/EUP math stay float32.
    """
    E = raw["wo"].shape[0]
    H = raw["w1"].shape[0]
    Ep = _round_up(E, _LANE)
    Hp = _round_up(H, _LANE)
    scale = 1.0 / math.sqrt(E)            # fold 1/sqrt(E) into the q projection

    def pad2(a, r, c):
        return jnp.pad(a, ((0, r - a.shape[0]), (0, c - a.shape[1])))

    def pad1(v):
        return jnp.pad(v, (0, Ep - v.shape[0]))

    wq, wk, wv = (raw["in_proj_w"][i * E:(i + 1) * E] for i in range(3))
    bq, bk, bv = (raw["in_proj_b"][i * E:(i + 1) * E] for i in range(3))

    wqkv_t = jnp.concatenate(
        [pad2(wq.T * scale, Ep, Ep), pad2(wk.T, Ep, Ep), pad2(wv.T, Ep, Ep)], axis=1)
    bqkv = jnp.concatenate(
        [pad2((bq * scale)[None, :], 1, Ep), pad2(bk[None, :], 1, Ep),
         pad2(bv[None, :], 1, Ep)], axis=1)

    vecs = jnp.stack([pad1(raw["bo"]), pad1(raw["ln1_g"]), pad1(raw["ln1_b"]),
                      pad1(raw["b2"]), pad1(raw["ln2_g"]), pad1(raw["ln2_b"])], axis=0)

    return {
        "E": E, "H": H, "Ep": Ep, "Hp": Hp,
        "wqkv_t": wqkv_t.astype(matmul_dtype),
        "bqkv": bqkv.astype(jnp.float32),
        "wo_t": pad2(raw["wo"].T, Ep, Ep).astype(matmul_dtype),
        "w1_t": pad2(raw["w1"].T, Ep, Hp).astype(matmul_dtype),
        "b1": pad2(raw["b1"][None, :], 1, Hp).astype(jnp.float32),
        "w2_t": pad2(raw["w2"].T, Hp, Ep).astype(matmul_dtype),
        "vecs": vecs.astype(jnp.float32),
    }


def init_raw_params(key, embed_dim, ff_hidden_multiplier=4):
    """Deterministic synthetic parameters in the torch nn.Module layout."""
    E = embed_dim
    H = ff_hidden_multiplier * E
    ks = jax.random.split(key, 12)
    s = 0.1
    return {
        "in_proj_w": jax.random.normal(ks[0], (3 * E, E), jnp.float32) * s,
        "in_proj_b": jax.random.normal(ks[1], (3 * E,), jnp.float32) * s,
        "wo": jax.random.normal(ks[2], (E, E), jnp.float32) * s,
        "bo": jax.random.normal(ks[3], (E,), jnp.float32) * s,
        "ln1_g": 1.0 + jax.random.normal(ks[4], (E,), jnp.float32) * s,
        "ln1_b": jax.random.normal(ks[5], (E,), jnp.float32) * s,
        "w1": jax.random.normal(ks[6], (H, E), jnp.float32) * s,    # nn.Linear(E, H).weight
        "b1": jax.random.normal(ks[7], (H,), jnp.float32) * s,
        "w2": jax.random.normal(ks[8], (E, H), jnp.float32) * s,    # nn.Linear(H, E).weight
        "b2": jax.random.normal(ks[9], (E,), jnp.float32) * s,
        "ln2_g": 1.0 + jax.random.normal(ks[10], (E,), jnp.float32) * s,
        "ln2_b": jax.random.normal(ks[11], (E,), jnp.float32) * s,
    }


# --------------------------------------------------------------------------- reference

def _layernorm_ref(y, gamma, beta):
    mu = jnp.mean(y, axis=-1, keepdims=True)
    var = jnp.mean((y - mu) ** 2, axis=-1, keepdims=True)
    return (y - mu) * lax.rsqrt(var + EPS) * gamma + beta


def reference_block(x, raw):
    """Pure-JAX reference: same math as the PyTorch module in eval mode."""
    E = x.shape[-1]
    scale = 1.0 / math.sqrt(E)
    wq, wk, wv = (raw["in_proj_w"][i * E:(i + 1) * E] for i in range(3))
    bq, bk, bv = (raw["in_proj_b"][i * E:(i + 1) * E] for i in range(3))
    q = (x @ wq.T + bq) * scale
    k = x @ wk.T + bk
    v = x @ wv.T + bv
    attn = jax.nn.softmax(jnp.einsum("bqe,bke->bqk", q, k), axis=-1)
    attn_out = jnp.einsum("bqk,bke->bqe", attn, v) @ raw["wo"].T + raw["bo"]
    y = _layernorm_ref(x + attn_out, raw["ln1_g"], raw["ln1_b"])
    h = _gelu_exact(y @ raw["w1"].T + raw["b1"])
    ff = h @ raw["w2"].T + raw["b2"]
    return _layernorm_ref(y + ff, raw["ln2_g"], raw["ln2_b"])


# --------------------------------------------------------------------------- main

if __name__ == "__main__":
    B, S, E = 2, 8, 32          # batch, sequence, embed_dim
    key = jax.random.PRNGKey(0)
    kx, kp = jax.random.split(key)
    x = jax.random.normal(kx, (B, S, E), jnp.float32)
    raw = init_raw_params(kp, E, ff_hidden_multiplier=4)
    ref = reference_block(x, raw)

    # fp32 MXU operands (tight check)
    prep_f32 = prepare_params(raw, jnp.float32)
    out_f32 = jax.block_until_ready(improved_attention_block(x, prep_f32))
    assert out_f32.shape == (B, S, E)
    assert jnp.allclose(out_f32, ref, atol=2e-3, rtol=2e-3)

    # bf16 MXU operands (v6e/v7x-native path), f32 accumulation / softmax / LN / GELU
    prep_bf16 = prepare_params(raw, jnp.bfloat16)
    out_bf16 = jax.block_until_ready(improved_attention_block(x, prep_bf16))
    assert out_bf16.shape == (B, S, E)
    assert jnp.allclose(out_bf16, ref, atol=1e-1, rtol=1e-1)

    print("KERNEL_OK")
</pallas_src>

<mosaic_0001>
module attributes {stable_mosaic.version = 11 : i64} {
  func.func @_attention_block_kernel(%arg0: i32, %arg1: memref<1x8x128xf32, #tpu.memory_space<vmem>>, %arg2: memref<128x384xf32, #tpu.memory_space<vmem>>, %arg3: memref<1x384xf32, #tpu.memory_space<vmem>>, %arg4: memref<128x128xf32, #tpu.memory_space<vmem>>, %arg5: memref<128x128xf32, #tpu.memory_space<vmem>>, %arg6: memref<1x128xf32, #tpu.memory_space<vmem>>, %arg7: memref<128x128xf32, #tpu.memory_space<vmem>>, %arg8: memref<6x128xf32, #tpu.memory_space<vmem>>, %arg9: memref<1x8x128xf32, #tpu.memory_space<vmem>>) attributes {dimension_semantics = [#tpu.dimension_semantics<parallel>], iteration_bounds = array<i64: 2>, scalar_prefetch = 0 : i64, scratch_operands = 0 : i64, tpu.core_type = #tpu.core_type<tc>, window_params = [{transform_indices = @transform_0, window_bounds = array<i64: 1, 8, 128>}, {pipeline_mode = #tpu.pipeline_mode<synchronous>, transform_indices = @transform_1, window_bounds = array<i64: 128, 384>}, {pipeline_mode = #tpu.pipeline_mode<synchronous>, transform_indices = @transform_2, window_bounds = array<i64: 1, 384>}, {pipeline_mode = #tpu.pipeline_mode<synchronous>, transform_indices = @transform_3, window_bounds = array<i64: 128, 128>}, {pipeline_mode = #tpu.pipeline_mode<synchronous>, transform_indices = @transform_4, window_bounds = array<i64: 128, 128>}, {pipeline_mode = #tpu.pipeline_mode<synchronous>, transform_indices = @transform_5, window_bounds = array<i64: 1, 128>}, {pipeline_mode = #tpu.pipeline_mode<synchronous>, transform_indices = @transform_6, window_bounds = array<i64: 128, 128>}, {pipeline_mode = #tpu.pipeline_mode<synchronous>, transform_indices = @transform_7, window_bounds = array<i64: 6, 128>}, {transform_indices = @transform_8, window_bounds = array<i64: 1, 8, 128>}]} {
    %0 = tpu.iota {dimensions = array<i32: 1>} : vector<1x128xi32>
    %c32_i32 = arith.constant 32 : i32
    %1 = vector.broadcast %c32_i32 : i32 to vector<1x128xi32>
    %2 = arith.cmpi slt, %0, %1 : vector<1x128xi32>
    %3 = arith.extui %2 : vector<1x128xi1> to vector<1x128xi32>
    %4 = arith.sitofp %3 : vector<1x128xi32> to vector<1x128xf32>
    %c0 = arith.constant 0 : index
    %c0_0 = arith.constant 0 : index
    %5 = vector.load %arg8[%c0, %c0_0] : memref<6x128xf32, #tpu.memory_space<vmem>>, vector<6x128xf32>
    %6 = vector.extract_strided_slice %5 {offsets = [0, 0], sizes = [1, 128], strides = [1, 1]} : vector<6x128xf32> to vector<1x128xf32>
    %7 = vector.extract_strided_slice %5 {offsets = [1, 0], sizes = [1, 128], strides = [1, 1]} : vector<6x128xf32> to vector<1x128xf32>
    %8 = vector.extract_strided_slice %5 {offsets = [2, 0], sizes = [1, 128], strides = [1, 1]} : vector<6x128xf32> to vector<1x128xf32>
    %9 = vector.extract_strided_slice %5 {offsets = [3, 0], sizes = [1, 128], strides = [1, 1]} : vector<6x128xf32> to vector<1x128xf32>
    %10 = vector.extract_strided_slice %5 {offsets = [4, 0], sizes = [1, 128], strides = [1, 1]} : vector<6x128xf32> to vector<1x128xf32>
    %11 = vector.extract_strided_slice %5 {offsets = [5, 0], sizes = [1, 128], strides = [1, 1]} : vector<6x128xf32> to vector<1x128xf32>
    %c0_1 = arith.constant 0 : index
    %c0_2 = arith.constant 0 : index
    %c0_3 = arith.constant 0 : index
    %12 = vector.load %arg1[%c0_1, %c0_2, %c0_3] : memref<1x8x128xf32, #tpu.memory_space<vmem>>, vector<1x8x128xf32>
    %13 = vector.shape_cast %12 : vector<1x8x128xf32> to vector<8x128xf32>
    %c0_4 = arith.constant 0 : index
    %c0_5 = arith.constant 0 : index
    %14 = vector.load %arg2[%c0_4, %c0_5] : memref<128x384xf32, #tpu.memory_space<vmem>>, vector<128x384xf32>
    %cst = arith.constant dense<0.000000e+00> : vector<8x384xf32>
    %15 = tpu.matmul %13, %14, %cst {dimension_numbers = #tpu.dot_dimension_numbers<[1], [0], [0], [1], [0, 0, 1, 1], [], []>} : vector<8x128xf32>, vector<128x384xf32>, vector<8x384xf32> -> vector<8x384xf32>
    %c0_6 = arith.constant 0 : index
    %c0_7 = arith.constant 0 : index
    %16 = vector.load %arg3[%c0_6, %c0_7] : memref<1x384xf32, #tpu.memory_space<vmem>>, vector<1x384xf32>
    %17 = vector.broadcast %16 : vector<1x384xf32> to vector<8x384xf32>
    %18 = arith.addf %15, %17 : vector<8x384xf32>
    %19 = vector.extract_strided_slice %18 {offsets = [0, 0], sizes = [8, 128], strides = [1, 1]} : vector<8x384xf32> to vector<8x128xf32>
    %20 = vector.shape_cast %19 : vector<8x128xf32> to vector<1x8x128xf32>
    %21 = vector.extract_strided_slice %18 {offsets = [0, 128], sizes = [8, 128], strides = [1, 1]} : vector<8x384xf32> to vector<8x128xf32>
    %22 = vector.shape_cast %21 : vector<8x128xf32> to vector<1x8x128xf32>
    %23 = vector.extract_strided_slice %18 {offsets = [0, 256], sizes = [8, 128], strides = [1, 1]} : vector<8x384xf32> to vector<8x128xf32>
    %24 = vector.shape_cast %23 : vector<8x128xf32> to vector<1x8x128xf32>
    "tpu.trace_start"() <{level = 10 : i32, message = "bqe,bke->bqk"}> : () -> ()
    %cst_8 = arith.constant dense<0.000000e+00> : vector<1x8x8xf32>
    %25 = tpu.matmul %20, %22, %cst_8 {dimension_numbers = #tpu.dot_dimension_numbers<[2], [2], [1], [1], [0, 0, 0, 1, 1, 1], [0], [0]>} : vector<1x8x128xf32>, vector<1x8x128xf32>, vector<1x8x8xf32> -> vector<1x8x8xf32>
    "tpu.trace_stop"() : () -> ()
    %cst_9 = arith.constant dense<0xFF800000> : vector<1x8xf32>
    %26 = vector.multi_reduction <maximumf>, %25, %cst_9 [2] : vector<1x8x8xf32> to vector<1x8xf32>
    %27 = vector.shape_cast %26 : vector<1x8xf32> to vector<1x8x1xf32>
    %28 = vector.broadcast %27 : vector<1x8x1xf32> to vector<1x8x8xf32>
    %29 = arith.subf %25, %28 : vector<1x8x8xf32>
    %30 = math.exp %29 : vector<1x8x8xf32>
    %cst_10 = arith.constant dense<0.000000e+00> : vector<1x8xf32>
    %31 = vector.multi_reduction <add>, %30, %cst_10 [2] : vector<1x8x8xf32> to vector<1x8xf32>
    %32 = vector.shape_cast %31 : vector<1x8xf32> to vector<1x8x1xf32>
    %33 = tpu.reciprocal %32 {approx = true} : vector<1x8x1xf32> -> vector<1x8x1xf32>
    %34 = vector.broadcast %33 : vector<1x8x1xf32> to vector<1x8x8xf32>
    %35 = arith.mulf %30, %34 : vector<1x8x8xf32>
    "tpu.trace_start"() <{level = 10 : i32, message = "bqk,bke->bqe"}> : () -> ()
    %cst_11 = arith.constant dense<0.000000e+00> : vector<1x8x128xf32>
    %36 = tpu.matmul %35, %24, %cst_11 {dimension_numbers = #tpu.dot_dimension_numbers<[2], [1], [1], [2], [0, 0, 0, 1, 1, 2], [0], [0]>} : vector<1x8x8xf32>, vector<1x8x128xf32>, vector<1x8x128xf32> -> vector<1x8x128xf32>
    "tpu.trace_stop"() : () -> ()
    %37 = vector.shape_cast %36 : vector<1x8x128xf32> to vector<8x128xf32>
    %c0_12 = arith.constant 0 : index
    %c0_13 = arith.constant 0 : index
    %38 = vector.load %arg4[%c0_12, %c0_13] : memref<128x128xf32, #tpu.memory_space<vmem>>, vector<128x128xf32>
    %cst_14 = arith.constant dense<0.000000e+00> : vector<8x128xf32>
    %39 = tpu.matmul %37, %38, %cst_14 {dimension_numbers = #tpu.dot_dimension_numbers<[1], [0], [0], [1], [0, 0, 1, 1], [], []>} : vector<8x128xf32>, vector<128x128xf32>, vector<8x128xf32> -> vector<8x128xf32>
    %40 = vector.broadcast %6 : vector<1x128xf32> to vector<8x128xf32>
    %41 = arith.addf %39, %40 : vector<8x128xf32>
    %42 = arith.addf %13, %41 : vector<8x128xf32>
    %43 = vector.broadcast %4 : vector<1x128xf32> to vector<8x128xf32>
    %44 = arith.mulf %42, %43 : vector<8x128xf32>
    %cst_15 = arith.constant dense<0.000000e+00> : vector<8xf32>
    %45 = vector.multi_reduction <add>, %44, %cst_15 [1] : vector<8x128xf32> to vector<8xf32>
    %46 = vector.shape_cast %45 : vector<8xf32> to vector<8x1xf32>
    %cst_16 = arith.constant 3.125000e-02 : f32
    %47 = vector.broadcast %cst_16 : f32 to vector<8x1xf32>
    %48 = arith.mulf %46, %47 : vector<8x1xf32>
    %49 = vector.broadcast %48 : vector<8x1xf32> to vector<8x128xf32>
    %50 = arith.subf %42, %49 : vector<8x128xf32>
    %51 = vector.broadcast %4 : vector<1x128xf32> to vector<8x128xf32>
    %52 = arith.mulf %50, %51 : vector<8x128xf32>
    %53 = arith.mulf %52, %52 : vector<8x128xf32>
    %cst_17 = arith.constant dense<0.000000e+00> : vector<8xf32>
    %54 = vector.multi_reduction <add>, %53, %cst_17 [1] : vector<8x128xf32> to vector<8xf32>
    %55 = vector.shape_cast %54 : vector<8xf32> to vector<8x1xf32>
    %cst_18 = arith.constant 3.125000e-02 : f32
    %56 = vector.broadcast %cst_18 : f32 to vector<8x1xf32>
    %57 = arith.mulf %55, %56 : vector<8x1xf32>
    %cst_19 = arith.constant 9.99999974E-6 : f32
    %58 = vector.broadcast %cst_19 : f32 to vector<8x1xf32>
    %59 = arith.addf %57, %58 : vector<8x1xf32>
    %60 = math.rsqrt %59 : vector<8x1xf32>
    %61 = vector.broadcast %60 : vector<8x1xf32> to vector<8x128xf32>
    %62 = arith.mulf %50, %61 : vector<8x128xf32>
    %63 = vector.broadcast %7 : vector<1x128xf32> to vector<8x128xf32>
    %64 = arith.mulf %62, %63 : vector<8x128xf32>
    %65 = vector.broadcast %8 : vector<1x128xf32> to vector<8x128xf32>
    %66 = arith.addf %64, %65 : vector<8x128xf32>
    %c0_20 = arith.constant 0 : index
    %c0_21 = arith.constant 0 : index
    %67 = vector.load %arg5[%c0_20, %c0_21] : memref<128x128xf32, #tpu.memory_space<vmem>>, vector<128x128xf32>
    %cst_22 = arith.constant dense<0.000000e+00> : vector<8x128xf32>
    %68 = tpu.matmul %66, %67, %cst_22 {dimension_numbers = #tpu.dot_dimension_numbers<[1], [0], [0], [1], [0, 0, 1, 1], [], []>} : vector<8x128xf32>, vector<128x128xf32>, vector<8x128xf32> -> vector<8x128xf32>
    %c0_23 = arith.constant 0 : index
    %c0_24 = arith.constant 0 : index
    %69 = vector.load %arg6[%c0_23, %c0_24] : memref<1x128xf32, #tpu.memory_space<vmem>>, vector<1x128xf32>
    %70 = vector.broadcast %69 : vector<1x128xf32> to vector<8x128xf32>
    %71 = arith.addf %68, %70 : vector<8x128xf32>
    %cst_25 = arith.constant 5.000000e-01 : f32
    %72 = vector.broadcast %cst_25 : f32 to vector<8x128xf32>
    %73 = arith.mulf %72, %71 : vector<8x128xf32>
    %cst_26 = arith.constant 0.707106769 : f32
    %74 = vector.broadcast %cst_26 : f32 to vector<8x128xf32>
    %75 = arith.mulf %71, %74 : vector<8x128xf32>
    %76 = math.erf %75 : vector<8x128xf32>
    %cst_27 = arith.constant 1.000000e+00 : f32
    %77 = vector.broadcast %cst_27 : f32 to vector<8x128xf32>
    %78 = arith.addf %77, %76 : vector<8x128xf32>
    %79 = arith.mulf %73, %78 : vector<8x128xf32>
    %c0_28 = arith.constant 0 : index
    %c0_29 = arith.constant 0 : index
    %80 = vector.load %arg7[%c0_28, %c0_29] : memref<128x128xf32, #tpu.memory_space<vmem>>, vector<128x128xf32>
    %cst_30 = arith.constant dense<0.000000e+00> : vector<8x128xf32>
    %81 = tpu.matmul %79, %80, %cst_30 {dimension_numbers = #tpu.dot_dimension_numbers<[1], [0], [0], [1], [0, 0, 1, 1], [], []>} : vector<8x128xf32>, vector<128x128xf32>, vector<8x128xf32> -> vector<8x128xf32>
    %82 = vector.broadcast %9 : vector<1x128xf32> to vector<8x128xf32>
    %83 = arith.addf %81, %82 : vector<8x128xf32>
    %84 = arith.addf %66, %83 : vector<8x128xf32>
    %85 = vector.broadcast %4 : vector<1x128xf32> to vector<8x128xf32>
    %86 = arith.mulf %84, %85 : vector<8x128xf32>
    %cst_31 = arith.constant dense<0.000000e+00> : vector<8xf32>
    %87 = vector.multi_reduction <add>, %86, %cst_31 [1] : vector<8x128xf32> to vector<8xf32>
    %88 = vector.shape_cast %87 : vector<8xf32> to vector<8x1xf32>
    %cst_32 = arith.constant 3.125000e-02 : f32
    %89 = vector.broadcast %cst_32 : f32 to vector<8x1xf32>
    %90 = arith.mulf %88, %89 : vector<8x1xf32>
    %91 = vector.broadcast %90 : vector<8x1xf32> to vector<8x128xf32>
    %92 = arith.subf %84, %91 : vector<8x128xf32>
    %93 = vector.broadcast %4 : vector<1x128xf32> to vector<8x128xf32>
    %94 = arith.mulf %92, %93 : vector<8x128xf32>
    %95 = arith.mulf %94, %94 : vector<8x128xf32>
    %cst_33 = arith.constant dense<0.000000e+00> : vector<8xf32>
    %96 = vector.multi_reduction <add>, %95, %cst_33 [1] : vector<8x128xf32> to vector<8xf32>
    %97 = vector.shape_cast %96 : vector<8xf32> to vector<8x1xf32>
    %cst_34 = arith.constant 3.125000e-02 : f32
    %98 = vector.broadcast %cst_34 : f32 to vector<8x1xf32>
    %99 = arith.mulf %97, %98 : vector<8x1xf32>
    %cst_35 = arith.constant 9.99999974E-6 : f32
    %100 = vector.broadcast %cst_35 : f32 to vector<8x1xf32>
    %101 = arith.addf %99, %100 : vector<8x1xf32>
    %102 = math.rsqrt %101 : vector<8x1xf32>
    %103 = vector.broadcast %102 : vector<8x1xf32> to vector<8x128xf32>
    %104 = arith.mulf %92, %103 : vector<8x128xf32>
    %105 = vector.broadcast %10 : vector<1x128xf32> to vector<8x128xf32>
    %106 = arith.mulf %104, %105 : vector<8x128xf32>
    %107 = vector.broadcast %11 : vector<1x128xf32> to vector<8x128xf32>
    %108 = arith.addf %106, %107 : vector<8x128xf32>
    %109 = vector.shape_cast %108 : vector<8x128xf32> to vector<1x8x128xf32>
    %c0_36 = arith.constant 0 : index
    %c0_37 = arith.constant 0 : index
    %c0_38 = arith.constant 0 : index
    %110 = vector.load %arg9[%c0_36, %c0_37, %c0_38] : memref<1x8x128xf32, #tpu.memory_space<vmem>>, vector<1x8x128xf32>
    tpu.vector_store %arg9[%c0_36, %c0_37, %c0_38], %109 {strides = array<i32>} : memref<1x8x128xf32, #tpu.memory_space<vmem>>, vector<1x8x128xf32>,
    return
  }
  func.func @transform_0(%arg0: i32) -> (i32, i32, i32) {
    %c0_i32 = arith.constant 0 : i32
    %c0_i32_0 = arith.constant 0 : i32
    %c0_i32_1 = arith.constant 0 : i32
    return %arg0, %c0_i32, %c0_i32_0 : i32, i32, i32
  }
  func.func @transform_1(%arg0: i32) -> (i32, i32) {
    %c0_i32 = arith.constant 0 : i32
    %c0_i32_0 = arith.constant 0 : i32
    %c0_i32_1 = arith.constant 0 : i32
    return %c0_i32, %c0_i32_0 : i32, i32
  }
  func.func @transform_2(%arg0: i32) -> (i32, i32) {
    %c0_i32 = arith.constant 0 : i32
    %c0_i32_0 = arith.constant 0 : i32
    %c0_i32_1 = arith.constant 0 : i32
    return %c0_i32, %c0_i32_0 : i32, i32
  }
  func.func @transform_3(%arg0: i32) -> (i32, i32) {
    %c0_i32 = arith.constant 0 : i32
    %c0_i32_0 = arith.constant 0 : i32
    %c0_i32_1 = arith.constant 0 : i32
    return %c0_i32, %c0_i32_0 : i32, i32
  }
  func.func @transform_4(%arg0: i32) -> (i32, i32) {
    %c0_i32 = arith.constant 0 : i32
    %c0_i32_0 = arith.constant 0 : i32
    %c0_i32_1 = arith.constant 0 : i32
    return %c0_i32, %c0_i32_0 : i32, i32
  }
  func.func @transform_5(%arg0: i32) -> (i32, i32) {
    %c0_i32 = arith.constant 0 : i32
    %c0_i32_0 = arith.constant 0 : i32
    %c0_i32_1 = arith.constant 0 : i32
    return %c0_i32, %c0_i32_0 : i32, i32
  }
  func.func @transform_6(%arg0: i32) -> (i32, i32) {
    %c0_i32 = arith.constant 0 : i32
    %c0_i32_0 = arith.constant 0 : i32
    %c0_i32_1 = arith.constant 0 : i32
    return %c0_i32, %c0_i32_0 : i32, i32
  }
  func.func @transform_7(%arg0: i32) -> (i32, i32) {
    %c0_i32 = arith.constant 0 : i32
    %c0_i32_0 = arith.constant 0 : i32
    %c0_i32_1 = arith.constant 0 : i32
    return %c0_i32, %c0_i32_0 : i32, i32
  }
  func.func @transform_8(%arg0: i32) -> (i32, i32, i32) {
    %c0_i32 = arith.constant 0 : i32
    %c0_i32_0 = arith.constant 0 : i32
    %c0_i32_1 = arith.constant 0 : i32
    return %arg0, %c0_i32, %c0_i32_0 : i32, i32, i32
  }
}

</mosaic_0001>

<bundles_post_ra>
// kernel: tpu_custom_call.1
= control target key start
LH: loop header
LB: loop body
LE: loop exit
PB: predicated region body
PF: predicated region fallthrough
CT: control target
= control target key end

     0   :  { %s2342_s0 = inlined_call_operand.hbm [shape: f32[2,8,128], index: 0, kind: input, shape index: {}]   ;;  %s2343_s1 = inlined_call_operand.hbm [shape: f32[128,384], index: 1, kind: input, shape index: {}]   ;;  %s2344_s2 = inlined_call_operand.vmem [shape: f32[1,384], index: 2, kind: input, shape index: {}]   ;;  %s2345_s3 = inlined_call_operand.hbm [shape: f32[128,128], index: 3, kind: input, shape index: {}]   ;;  %s2346_s4 = inlined_call_operand.hbm [shape: f32[128,128], index: 4, kind: input, shape index: {}]   ;;  %s2347_s5 = inlined_call_operand.vmem [shape: f32[1,128], index: 5, kind: input, shape index: {}]   ;;  %s2348_s6 = inlined_call_operand.hbm [shape: f32[128,128], index: 6, kind: input, shape index: {}]   ;;  %s2349_s7 = inlined_call_operand.vmem [shape: f32[6,128], index: 7, kind: input, shape index: {}]   ;;  %s2350_s8 = inlined_call_operand.hbm [shape: f32[2,8,128], index: 8, kind: output, shape index: {}]  }
   0x1   :  { %2354 = sst [smem:[#allocation16_spill]] %s2343_s1 }
   0x2   :  { %13 = vsyncpa [#allocation3], 0 }
   0x3   :  { %15 = vsyncpa [#allocation3 + $0x1], 0 }
   0x4   :  { %16 = vsyncpa [#allocation6], 0 }
   0x5   :  { %17 = vsyncpa [#allocation9], 0 }
   0x6   :  { %18 = vsyncpa [#allocation4], 0 }
   0x7   :  { %20 = vsyncpa [#allocation4 + $0x1], 0  ;;  %s1949_s27 = smov 0   ;;  %s1951_s28 = smov 0  }
   0x8   :  { %s1953_s29 = smov 0   ;;  %s1955_s30 = smov 0  }
   0x9 LB: > { %s1891_s9 = smov [#allocation5]   ;;  %s1970_s11 = sadd.s32 4294967295, %s1889_s30   ;;  %s1889_s30 = sphi %s1955_s30, %s2376_s30   ;;  %s1885_s29 = sphi %s1953_s29, %s2375_s29   ;;  %s1881_s28 = sphi %s1951_s28, %s2374_s28   ;;  %s1877_s27 = sphi %s1949_s27, %s2373_s27  }
   0xa   : > { %s242_s10 = sshll.u32 %s1891_s9, 4  ;;  %p1197_p0 = scmp.ge.s32.totalorder %s1889_s30, 1  ;;  %s1975_s10 = int_to_ptr.vmem [resolvable:$true] %s242_s10 }
   0xb   : > { %p2351_p1 = scmp.eq.s32.totalorder %s1970_s11, 0  ;;  %p230_p2 = scmp.lt.s32.totalorder %s1889_s30, 3 }
   0xc   : > { %s1892_s14 = smov [#allocation8]   ;;  %s1893_s16 = smov [#allocation7]  }
   0xd   : > { %p1977_p3 = pnand %p1197_p0, %p230_p2  ;;  %s271_s15 = sshll.u32 %s1892_s14, 4  ;;  %s1990_s15 = int_to_ptr.vmem [resolvable:$true] %s271_s15 }
   0xe   : > { %s1992_s17 = sshll.u32 %s1893_s16, 4  ;;  %s2357_s1 = sld [smem:[#allocation16_spill]]  ;;  %s259_s17 = int_to_ptr.vmem [resolvable:$true] %s1992_s17 }
   0xf   : > { %s2355_s12 = scalar_select %p1977_p3, 1, 0 }
  0x10   : > { %p1589_p5 = pneg %p1977_p3 }
  0x12   : > { %p1986_p6 = pnand %p1589_p5, %p2351_p1 }
  0x14   : > { %s1673_s20 = scalar_lea.hbm %s2357_s1, 6144  ;;  %p2002_p8 = pneg %p1986_p6 }
  0x15   : > { %p1674_p7 = scmp.ne.s32.totalorder %s2357_s1, %s1673_s20  ;;  %p1680_p11 = scmp.lt.u32.totalorder %s1673_s20, %s2357_s1 }
  0x17   : > { %p1676_p9 = pnand %p2002_p8, %p1674_p7 }
  0x19   : > { %p1677_p10 = pneg %p1676_p9 }
  0x1b   : > { %p1682_p12 = pnand %p1680_p11, %p1677_p10 }
  0x1d   : > { %1685 = shalt.err (!%p1682_p12)
}
  0x1e   : > { %s1686_s26 = scalar_lea.vmem %s1975_s10, 6144  ;;  %p1694_p5 = scmp.lt.s32.totalorder %s1975_s10, %s1975_s10 }
  0x1f   : > { %p1687_p13 = scmp.ne.s32.totalorder %s1975_s10, %s1686_s26  ;;  %p1695_p4 = scmp.lt.s32.totalorder %s1686_s26, %s1686_s26 }
  0x21   : > { %p1689_p0 = pnand %p1687_p13, %p2002_p8  ;;  %p1696_p7 = por %p1695_p4, %p1694_p5 }
  0x23   : > { %p1690_p2 = pneg %p1689_p0 }
  0x25   : > { %p1697_p9 = pnand %p1696_p7, %p1690_p2 }
  0x27   : > { %1700 = shalt.err (!%p1697_p9)
}
  0x28   : > { %s1894_s9 = smov 384   ;;  %s1895_s14 = smov 24  }
  0x29   : > { %1592 = dma.hbm_to_vmem [thread:$0]  (!%p1986_p6), %s2357_s1, 6144, %s1975_s10, [#allocation6], %s1894_s9, %s1894_s9, %s1895_s14  }
  0x2a   : > { %s1701_s21 = scalar_lea.hbm %s2346_s4, 2048 }
  0x2b   : > { %p1702_p4 = scmp.ne.s32.totalorder %s2346_s4, %s1701_s21  ;;  %p1708_p12 = scmp.lt.u32.totalorder %s1701_s21, %s2346_s4 }
  0x2d   : > { %p1704_p10 = pnand %p1702_p4, %p2002_p8 }
  0x2f   : > { %p1705_p11 = pneg %p1704_p10 }
  0x31   : > { %p1710_p13 = pnand %p1708_p12, %p1705_p11 }
  0x33   : > { %1713 = shalt.err (!%p1710_p13)
}
  0x34   : > { %s1714_s10 = scalar_lea.vmem %s1990_s15, 2048  ;;  %p1722_p7 = scmp.lt.s32.totalorder %s1990_s15, %s1990_s15 }
  0x35   : > { %p1715_p0 = scmp.ne.s32.totalorder %s1990_s15, %s1714_s10  ;;  %p1723_p9 = scmp.lt.s32.totalorder %s1714_s10, %s1714_s10 }
  0x37   : > { %p1717_p2 = pnand %p1715_p0, %p2002_p8  ;;  %p1724_p4 = por %p1723_p9, %p1722_p7 }
  0x39   : > { %p1718_p5 = pneg %p1717_p2 }
  0x3b   : > { %p1725_p10 = pnand %p1724_p4, %p1718_p5 }
  0x3d   : > { %1728 = shalt.err (!%p1725_p10)
}
  0x3e   : > { %s1896_s9 = smov 128   ;;  %s1897_s14 = smov 8  }
  0x3f   : > { %1598 = dma.hbm_to_vmem [thread:$0]  (!%p1986_p6), %s2346_s4, 2048, %s1990_s15, [#allocation9], %s1896_s9, %s1896_s9, %s1897_s14  }
  0x40   : > { %s1729_s21 = scalar_lea.hbm %s2345_s3, 2048 }
  0x41   : > { %p1730_p11 = scmp.ne.s32.totalorder %s2345_s3, %s1729_s21  ;;  %p1736_p0 = scmp.lt.u32.totalorder %s1729_s21, %s2345_s3 }
  0x43   : > { %p1732_p12 = pnand %p1730_p11, %p2002_p8 }
  0x45   : > { %p1733_p13 = pneg %p1732_p12 }
  0x47   : > { %p1738_p2 = pnand %p1736_p0, %p1733_p13 }
  0x49   : > { %1741 = shalt.err (!%p1738_p2)
}
  0x4a   : > { %s1742_s10 = scalar_lea.vmem %s259_s17, 2048  ;;  %p1750_p4 = scmp.lt.s32.totalorder %s259_s17, %s259_s17 }
  0x4b   : > { %p1743_p5 = scmp.ne.s32.totalorder %s259_s17, %s1742_s10  ;;  %p1751_p10 = scmp.lt.s32.totalorder %s1742_s10, %s1742_s10 }
  0x4d   : > { %p1745_p7 = pnand %p1743_p5, %p2002_p8  ;;  %p1752_p1 = por %p1751_p10, %p1750_p4 }
  0x4f   : > { %p1746_p9 = pneg %p1745_p7 }
  0x51   : > { %p1753_p3 = pnand %p1752_p1, %p1746_p9 }
  0x53   : > { %1756 = shalt.err (!%p1753_p3)
}
  0x54   : > { %1595 = dma.hbm_to_vmem [thread:$0]  (!%p1986_p6), %s2345_s3, 2048, %s259_s17, [#allocation6], %s1896_s9, %s1896_s9, %s1897_s14  }
  0x55   : > { %s1898_s18 = smov [#allocation10]   ;;  %s1757_s22 = scalar_lea.hbm %s2348_s6, 2048 }
  0x56   : > { %s287_s19 = sshll.u32 %s1898_s18, 4  ;;  %p1758_p1 = scmp.ne.s32.totalorder %s2348_s6, %s1757_s22  ;;  %s288_s19 = int_to_ptr.vmem [resolvable:$true] %s287_s19 }
  0x57   : > { %p1764_p12 = scmp.lt.u32.totalorder %s1757_s22, %s2348_s6 }
  0x58   : > { %p1760_p3 = pnand %p1758_p1, %p2002_p8 }
  0x5a   : > { %p1761_p11 = pneg %p1760_p3 }
  0x5c   : > { %p1766_p13 = pnand %p1764_p12, %p1761_p11 }
  0x5e   : > { %1769 = shalt.err (!%p1766_p13)
}
  0x5f   : > { %s1770_s17 = scalar_lea.vmem %s288_s19, 2048  ;;  %p1778_p7 = scmp.lt.s32.totalorder %s288_s19, %s288_s19 }
  0x60   : > { %p1771_p0 = scmp.ne.s32.totalorder %s288_s19, %s1770_s17  ;;  %p1779_p9 = scmp.lt.s32.totalorder %s1770_s17, %s1770_s17 }
  0x62   : > { %p1773_p2 = pnand %p1771_p0, %p2002_p8  ;;  %p1780_p4 = por %p1779_p9, %p1778_p7 }
  0x64   : > { %p1774_p5 = pneg %p1773_p2 }
  0x66   : > { %p1781_p10 = pnand %p1780_p4, %p1774_p5 }
  0x68   : > { %1784 = shalt.err (!%p1781_p10)
}
  0x69   : > { %1601 = dma.hbm_to_vmem [thread:$0]  (!%p1986_p6), %s2348_s6, 2048, %s288_s19, [#allocation9], %s1896_s9, %s1896_s9, %s1897_s14  }
  0x6a   : > { %s1196_s13 = sadd.s32 4294967294, %s1889_s30   ;;  %s2094_s23 = sadd.s32 1, %s1889_s30  }
  0x6b   : > { %s30_s18 = ssub.s32 %s1889_s30, %s2094_s23  ;;  %s33_s20 = sadd.s32 1, %s1885_s29 }
  0x6c   : > { %p31_p8 = scmp.eq.s32.totalorder %s30_s18, 0  ;;  %p40_p1 = scmp.ne.s32.totalorder %s1885_s29, %s1881_s28 }
  0x6d   : > { %p41_p3 = scmp.eq.s32.totalorder %s1889_s30, 0  ;;  %p46_p11 = scmp.ne.s32.totalorder %s1881_s28, %s1877_s27 }
  0x6e   : > { %s2105_s21 = scalar_select %p31_p8, %s1885_s29, %s33_s20  }
  0x6f   : > { %p2107_p12 = por %p41_p3, %p40_p1  ;;  %p2360_p13 = scmp.eq.s32.totalorder %s1970_s11, 0 }
  0x70   : > { %p217_p0 = scmp.eq.s32.totalorder %s1970_s11, 1  ;;  %p223_p2 = scmp.eq.s32.totalorder %s1196_s13, 1 }
  0x71   : > { %p2113_p6 = por %p2360_p13, %p46_p11  ;;  %p1614_p5 = scmp.lt.s32.totalorder %s1889_s30, 2 }
  0x72   : > { %s304_s14 = sand.u32 1, %s1885_s29   ;;  %p2120_p7 = por %p217_p0, %p40_p1 }
  0x73   : > { %p2124_p9 = por %p223_p2, %p46_p11  ;;  %s1203_s25 = sshll.u32 %s304_s14, 3 }
  0x74   : > { %s2362_s19 = scalar_select %p2120_p7, 1, 0 }
  0x75   : > { %s2363_s24 = scalar_select %p2124_p9, 1, 0 }
  0x76   : > { %s1204_s26 = sshll.u32 %s1889_s30, 7  ;;  %s308_s16 = scalar_lea.vmem [#allocation2], %s1203_s25 }
  0x77   : > { %s2132_s15 = scalar_lea.hbm %s2342_s0, %s1204_s26  ;;  %s315_s13 = sshll.u32 %s308_s16, 4  ;;  %s2134_s13 = int_to_ptr.vmem [resolvable:$true] %s315_s13 }
  0x78   : > { %p2138_p4 = pnand %p1614_p5, %p2107_p12  ;;  %s305_s20 = scalar_lea.sflag [#allocation3], %s304_s14 }
  0x79   : > { %s1785_s1 = scalar_lea.hbm %s2132_s15, 128  ;;  %s1790_s10 = scalar_lea.hbm %s2342_s0, 256 }
  0x7a   : > { %p1786_p10 = scmp.ne.s32.totalorder %s2132_s15, %s1785_s1  ;;  %p1787_p8 = pneg %p2138_p4 }
  0x7b   : > { %p1791_p11 = scmp.lt.u32.totalorder %s2132_s15, %s2342_s0  ;;  %p1792_p12 = scmp.lt.u32.totalorder %s1790_s10, %s1785_s1 }
  0x7c   : > { %p1788_p1 = pnand %p1787_p8, %p1786_p10  ;;  %p1794_p0 = scmp.lt.u32.totalorder %s1785_s1, %s2132_s15 }
  0x7d   : > { %p1793_p13 = por %p1792_p12, %p1791_p11 }
  0x7e   : > { %p1789_p3 = pneg %p1788_p1 }
  0x7f   : > { %p1795_p2 = por %p1794_p0, %p1793_p13 }
  0x81   : > { %p1796_p5 = pnand %p1795_p2, %p1789_p3 }
  0x83   : > { %1799 = shalt.err (!%p1796_p5)
}
  0x84   : > { %s1800_s14 = scalar_lea.vmem %s2134_s13, 128  ;;  %s1899_s16 = smov [#allocation2]  }
  0x85   : > { %p1801_p10 = scmp.ne.s32.totalorder %s2134_s13, %s1800_s14  ;;  %s1805_s25 = sshll.u32 %s1899_s16, 4  ;;  %s1806_s25 = int_to_ptr.vmem [resolvable:$false] %s1805_s25 }
  0x86   : > { %s1807_s26 = scalar_lea.vmem %s1806_s25, 256  ;;  %p1808_p7 = scmp.lt.s32.totalorder %s2134_s13, %s1806_s25 }
  0x87   : > { %p1803_p1 = pnand %p1801_p10, %p1787_p8  ;;  %p1809_p11 = scmp.lt.s32.totalorder %s1807_s26, %s1800_s14 }
  0x89   : > { %p1804_p9 = pneg %p1803_p1  ;;  %p1810_p12 = por %p1809_p11, %p1808_p7 }
  0x8b   : > { %p1811_p13 = pnand %p1810_p12, %p1804_p9 }
  0x8d   : > { %1814 = shalt.err (!%p1811_p13)
}
  0x8e   : > { %1605 = dma.hbm_to_vmem [thread:$0]  (!%p2138_p4), %s2132_s15, 128, %s2134_s13, %s305_s20  }
  0x8f   : > { %p2365_p3 = scmp.ne.s32.totalorder %s2355_s12, 0 }
  0x90   : > { %s2170_s1 = sand.u32 (!%p2365_p3), 1, %s1881_s28  }
  0x91   : > { %324 = sbr.rel (%p2365_p3) target bundleno = 2457 (0x999), region = 52  ;;  %s1206_s10 = sshll.u32 (!%p2365_p3), %s2170_s1, 3 }
  0x92   : > { %s327_s22 = scalar_lea.sflag (!%p2365_p3), [#allocation3], %s2170_s1  ;;  %s2176_s17 = scalar_lea.vmem (!%p2365_p3), [#allocation2], %s1206_s10 }
  0x98   : > { %1860 = dma.done.wait (%p2113_p6), %s327_s22, 128  }
  0x99   : > { %1862 = vsyncadd (%p2113_p6), %s327_s22, 4294967168  ;;  %p2366_p7 = scmp.eq.s32.totalorder %s1970_s11, 0 }
  0x9b   : > { %1864 = dma.done.wait (%p2366_p7), [#allocation6], 8192   ;;  %p2367_p9 = pmov %p2366_p7 }
  0x9c   : > { %p2368_p4 = pmov %p2366_p7 }
  0x9d   : > { %1866 = vsyncadd (%p2367_p9), [#allocation6], 4294959104 }
  0x9e   : > { %1868 = dma.done.wait (%p2368_p4), [#allocation9], 4096   ;;  %p2369_p8 = pmov %p2368_p4 }
  0x9f   : > { %v1900_v0 = vmov 0.0   ;;  %v1901_v1 = vmov 0.0|0.0   ;;  %v387_v2 = vld [vmem:[#allocation5 + $0x8] sm:$0xff]  ;;  %v390_v3 = vld [vmem:[#allocation5 + $0x20] sm:$0xff]  ;;  %v389_v6 = vld [vmem:[#allocation5 + $0x18] sm:$0xff]  ;;  %vm1902_vm0 = vmmov 0  }
  0xa0   : > { %1870 = vsyncadd (%p2369_p8), [#allocation9], 4294963200  ;;  %515 = vmatprep.mubr.f32.mxu0 %v1900_v0  ;;  %1473 = vmatprep.subr.bf16.mxu1 %v1901_v1  ;;  %v386_v4 = vld [vmem:[#allocation5] sm:$0xff]  ;;  %v1441_v5 = vpack.c.bf16 %v390_v3, %v387_v2  ;;  %v393_v7 = vld [vmem:[#allocation5 + $0x38] sm:$0xff]  ;;  %vm662_vm1 = vcmask 64512   ;;  %s1216_s14 = sshll.u32 %s1970_s11, 7 }
  0xa1   : > { %v396_v8 = vld [vmem:[#allocation5 + $0x50] sm:$0xff]  ;;  %v1443_v9 = vpack.c.bf16 %v389_v6, %v386_v4  ;;  %v395_v12 = vld [vmem:[#allocation5 + $0x48] sm:$0xff]  ;;  %v402_v14 = vld [vmem:[#allocation5 + $0x80] sm:$0xff]  ;;  %1323 = vmatprep.mubr.msk.f32.mxu1 %vm1902_vm0, %v1900_v0  ;;  %s378_s16 = scalar_lea.vmem [#allocation11], %s1206_s10  ;;  %s1075_s12 = scalar_lea.sflag [#allocation4], %s2170_s1 }
  0xa2   : > { %v1445_v10 = vpack.c.bf16 %v396_v8, %v393_v7  ;;  %v392_v11 = vld [vmem:[#allocation5 + $0x30] sm:$0xff]  ;;  %v399_v13 = vld [vmem:[#allocation5 + $0x68] sm:$0xff]  ;;  %1442 = vmatprep.subr.bf16.mxu0 %v1441_v5  ;;  %v398_v17 = vld [vmem:[#allocation5 + $0x60] sm:$0xff]  ;;  %s1088_s25 = sshll.u32 %s378_s16, 4  ;;  %p2370_p0 = scmp.ne.s32.totalorder %s2362_s19, 0  ;;  %s2300_s25 = int_to_ptr.vmem [resolvable:$true] %s1088_s25 }
  0xa3   : > { %1444 = vmatpush1.bf16.msra.mxu0 %v1443_v9  ;;  %v1447_v15 = vpack.c.bf16 %v395_v12, %v392_v11  ;;  %v1449_v16 = vpack.c.bf16 %v402_v14, %v399_v13  ;;  %v401_v18 = vld [vmem:[#allocation5 + $0x78] sm:$0xff]  ;;  %v408_v20 = vld [vmem:[#allocation5 + $0xb0] sm:$0xff]  ;;  %v407_v24 = vld [vmem:[#allocation5 + $0xa8] sm:$0xff]  ;;  %v379_v13 = vlaneseq  ;;  %s1815_s9 = scalar_lea.vmem %s2300_s25, 128  ;;  %s1903_s11 = smov [#allocation11]  }
  0xa4   : > { %1446 = vmatprep.subr.bf16.mxu0 %v1445_v10  ;;  %v405_v19 = vld [vmem:[#allocation5 + $0x98] sm:$0xff]  ;;  %v1451_v21 = vpack.c.bf16 %v401_v18, %v398_v17  ;;  %v404_v23 = vld [vmem:[#allocation5 + $0x90] sm:$0xff]  ;;  %v411_v25 = vld [vmem:[#allocation5 + $0xc8] sm:$0xff]  ;;  %p1816_p6 = scmp.ne.s32.totalorder %s2300_s25, %s1815_s9  ;;  %s1819_s10 = sshll.u32 %s1903_s11, 4  ;;  %s1820_s10 = int_to_ptr.vmem [resolvable:$false] %s1819_s10 }
  0xa5   : > { %v1453_v22 = vpack.c.bf16 %v408_v20, %v405_v19  ;;  %v414_v26 = vld [vmem:[#allocation5 + $0xe0] sm:$0xff]  ;;  %v388_v27 = vld [vmem:[#allocation5 + $0x10] sm:$0xff]  ;;  %v391_v28 = vld [vmem:[#allocation5 + $0x28] sm:$0xff]  ;;  %v1455_v30 = vpack.c.bf16 %v407_v24, %v404_v23  ;;  %v2213_v14 = vshrl.u32 %v379_v13, 7  ;;  %s1821_s15 = scalar_lea.vmem %s1820_s10, 256  ;;  %p1822_p10 = scmp.lt.s32.totalorder %s2300_s25, %s1820_s10 }
  0xa6   : > { %v394_v29 = vld [vmem:[#allocation5 + $0x40] sm:$0xff]  ;;  %v1474_v31 = vpack.c.bf16 %v391_v28, %v388_v27  ;;  %v397_v32 = vld [vmem:[#allocation5 + $0x58] sm:$0xff]  ;;  %v1457_v33 = vpack.c.bf16 %v414_v26, %v411_v25  ;;  %v420_v37 = vld [vmem:[#allocation5 + $0x110] sm:$0xff]  ;;  %p1817_p2 = pnand %p1816_p6, %p2370_p0  ;;  %p1823_p1 = scmp.lt.s32.totalorder %s1821_s15, %s1815_s9 }
  0xa7   : > { %1448 = vmatpush1.bf16.msra.mxu0 %v1447_v15  ;;  %v410_v34 = vld [vmem:[#allocation5 + $0xc0] sm:$0xff]  ;;  %v413_v35 = vld [vmem:[#allocation5 + $0xd8] sm:$0xff]  ;;  %v1477_v38 = vpack.c.bf16 %v397_v32, %v394_v29  ;;  %v400_v39 = vld [vmem:[#allocation5 + $0x70] sm:$0xff]  ;;  %v442_v15 = vsub.s32 1, %v2213_v14  ;;  %v438_v17 = vsub.s32 0, %v2213_v14  ;;  %v446_v24 = vsub.s32 2, %v2213_v14 }
  0xa8   : > { %1450 = vmatprep.subr.bf16.mxu0 %v1449_v16  ;;  %v417_v36 = vld [vmem:[#allocation5 + $0xf8] sm:$0xff]  ;;  %1475 = vmatpush3.bf16.msra.mxu1 %v1474_v31  ;;  %v403_v40 = vld [vmem:[#allocation5 + $0x88] sm:$0xff]  ;;  %v1459_v41 = vpack.c.bf16 %v413_v35, %v410_v34  ;;  %v416_v43 = vld [vmem:[#allocation5 + $0xf0] sm:$0xff]  ;;  %p1818_p5 = pneg %p1817_p2  ;;  %p1824_p11 = por %p1823_p1, %p1822_p10 }
  0xa9   : > { %1476 = vmatprep.subr.bf16.mxu1 %v1901_v1  ;;  %v1461_v42 = vpack.c.bf16 %v420_v37, %v417_v36  ;;  %v419_v44 = vld [vmem:[#allocation5 + $0x108] sm:$0xff]  ;;  %v426_v46 = vld [vmem:[#allocation5 + $0x140] sm:$0xff]  ;;  %v1480_v47 = vpack.c.bf16 %v403_v40, %v400_v39  ;;  %v409_v49 = vld [vmem:[#allocation5 + $0xb8] sm:$0xff] }
  0xaa   : > { %v423_v45 = vld [vmem:[#allocation5 + $0x128] sm:$0xff]  ;;  %v406_v48 = vld [vmem:[#allocation5 + $0xa0] sm:$0xff]  ;;  %v1463_v50 = vpack.c.bf16 %v419_v44, %v416_v43  ;;  %v425_v53 = vld [vmem:[#allocation5 + $0x138] sm:$0xff]  ;;  %p1825_p12 = pnand %p1824_p11, %p1818_p5 }
  0xab   : > { %1452 = vmatpush1.bf16.msra.mxu0 %v1451_v21  ;;  %v1465_v51 = vpack.c.bf16 %v426_v46, %v423_v45  ;;  %v422_v52 = vld [vmem:[#allocation5 + $0x120] sm:$0xff]  ;;  %v429_v54 = vld [vmem:[#allocation5 + $0x158] sm:$0xff]  ;;  %v432_v55 = vld [vmem:[#allocation5 + $0x170] sm:$0xff]  ;;  %v1483_v56 = vpack.c.bf16 %v409_v49, %v406_v48 }
  0xac   : > { %1454 = vmatprep.subr.bf16.mxu0 %v1453_v22  ;;  %1478 = vmatpush3.bf16.msra.mxu1 %v1477_v38  ;;  %v412_v57 = vld [vmem:[#allocation5 + $0xd0] sm:$0xff]  ;;  %v415_v58 = vld [vmem:[#allocation5 + $0xe8] sm:$0xff]  ;;  %v1467_v59 = vpack.c.bf16 %v425_v53, %v422_v52  ;;  %v1469_v60 = vpack.c.bf16 %v432_v55, %v429_v54  ;;  %v418_v2 = vld [vmem:[#allocation5 + $0x100] sm:$0xff] }
  0xad   : > { %1479 = vmatprep.subr.bf16.mxu1 %v1901_v1  ;;  %v428_v61 = vld [vmem:[#allocation5 + $0x150] sm:$0xff]  ;;  %v431_v62 = vld [vmem:[#allocation5 + $0x168] sm:$0xff]  ;;  %v1486_v63 = vpack.c.bf16 %v415_v58, %v412_v57  ;;  %v421_v3 = vld [vmem:[#allocation5 + $0x118] sm:$0xff] }
  0xae   : > { %v1471_v4 = vpack.c.bf16 %v431_v62, %v428_v61  ;;  %v1489_v5 = vpack.c.bf16 %v421_v3, %v418_v2  ;;  %v424_v6 = vld [vmem:[#allocation5 + $0x130] sm:$0xff]  ;;  %v427_v7 = vld [vmem:[#allocation5 + $0x148] sm:$0xff]  ;;  %v430_v10 = vld [vmem:[#allocation5 + $0x160] sm:$0xff] }
  0xaf   : > { %1456 = vmatpush1.bf16.msra.mxu0 %v1455_v30  ;;  %v2198_v8 = vld [vmem:[%s2176_s17] sm:$0xff]  ;;  %v1492_v9 = vpack.c.bf16 %v427_v7, %v424_v6  ;;  %v747_v37 = vld [vmem:[#allocation7] sm:$0xff]  ;;  %v748_v38 = vld [vmem:[#allocation7 + $0x8] sm:$0xff]  ;;  %s2298_s17 = scalar_lea.hbm %s2350_s8, %s1216_s14 }
  0xb0   : > { %1458 = vmatprep.subr.bf16.mxu0 %v1457_v33  ;;  %1481 = vmatpush3.bf16.msra.mxu1 %v1480_v47  ;;  %v433_v11 = vld [vmem:[#allocation5 + $0x178] sm:$0xff]  ;;  %v434_v16 = vld [vmem:[%s2344_s2] sm:$0x7]  ;;  %v1498_v40 = vpack.c.bf16 %v748_v38, %v747_v37  ;;  %v751_v43 = vld [vmem:[#allocation7 + $0x20] sm:$0xff] }
  0xb1   : > { %1482 = vmatprep.subr.bf16.mxu1 %v1901_v1  ;;  %v1495_v12 = vpack.c.bf16 %v433_v11, %v430_v10  ;;  %v443_v18 = vrot.slane %v434_v16, %v442_v15  ;;  %v439_v20 = vrot.slane %v434_v16, %v438_v17  ;;  %v447_v25 = vrot.slane %v434_v16, %v446_v24  ;;  %v749_v39 = vld [vmem:[#allocation7 + $0x10] sm:$0xff]  ;;  %v752_v44 = vld [vmem:[#allocation7 + $0x28] sm:$0xff]  ;;  %v754_v47 = vld [vmem:[#allocation7 + $0x38] sm:$0xff] }
  0xb2   : > { %v1504_v45 = vpack.c.bf16 %v752_v44, %v751_v43  ;;  %v753_v46 = vld [vmem:[#allocation7 + $0x30] sm:$0xff]  ;;  %v755_v49 = vld [vmem:[#allocation7 + $0x40] sm:$0xff]  ;;  %v758_v53 = vld [vmem:[#allocation7 + $0x58] sm:$0xff] }
  0xb3   : > { %1460 = vmatpush1.bf16.msra.mxu0 %v1459_v41  ;;  %v750_v41 = vld [vmem:[#allocation7 + $0x18] sm:$0xff]  ;;  %v1507_v48 = vpack.c.bf16 %v754_v47, %v753_v46  ;;  %v757_v52 = vld [vmem:[#allocation7 + $0x50] sm:$0xff]  ;;  %v759_v55 = vld [vmem:[#allocation7 + $0x60] sm:$0xff] }
  0xb4   : > { %1462 = vmatprep.subr.bf16.mxu0 %v1461_v42  ;;  %1484 = vmatpush3.bf16.msra.mxu1 %v1483_v56  ;;  %v1501_v42 = vpack.c.bf16 %v750_v41, %v749_v39  ;;  %v1513_v54 = vpack.c.bf16 %v758_v53, %v757_v52  ;;  %v760_v56 = vld [vmem:[#allocation7 + $0x68] sm:$0xff]  ;;  %v761_v58 = vld [vmem:[#allocation7 + $0x70] sm:$0xff]  ;;  %v873_v38 = vld [vmem:[#allocation8 + $0x60] sm:$0xff] }
  0xb5   : > { %1485 = vmatprep.subr.bf16.mxu1 %v1901_v1  ;;  %v1516_v57 = vpack.c.bf16 %v760_v56, %v759_v55  ;;  %v874_v39 = vld [vmem:[#allocation8 + $0x68] sm:$0xff]  ;;  %v875_v41 = vld [vmem:[#allocation8 + $0x70] sm:$0xff]  ;;  %v959_v44 = vld [vmem:[#allocation10] sm:$0xff] }
  0xb6   : > { %v961_v46 = vld [vmem:[#allocation10 + $0x10] sm:$0xff] }
  0xb7   : > { %1464 = vmatpush1.bf16.msra.mxu0 %v1463_v50  ;;  %v756_v50 = vld [vmem:[#allocation7 + $0x48] sm:$0xff] }
  0xb8   : > { %1466 = vmatprep.subr.bf16.mxu0 %v1465_v51  ;;  %1487 = vmatpush3.bf16.msra.mxu1 %v1486_v63  ;;  %v1510_v51 = vpack.c.bf16 %v756_v50, %v755_v49  ;;  %v963_v50 = vld [vmem:[#allocation10 + $0x20] sm:$0xff] }
  0xb9   : > { %1488 = vmatprep.subr.bf16.mxu1 %v1901_v1 }
  0xbb   : > { %1468 = vmatpush1.bf16.msra.mxu0 %v1467_v59  ;;  %v762_v59 = vld [vmem:[#allocation7 + $0x78] sm:$0xff] }
  0xbc   : > { %1470 = vmatprep.subr.bf16.mxu0 %v1469_v60  ;;  %1490 = vmatpush3.bf16.msra.mxu1 %v1489_v5  ;;  %v1519_v60 = vpack.c.bf16 %v762_v59, %v761_v58  ;;  %v380_v5 = vand.u32 127, %v379_v13 }
  0xbd   : > { %1491 = vmatprep.subr.bf16.mxu1 %v1901_v1 }
  0xbe   : > { %vm381_vm2 = vcmp.lt.s32.totalorder %v380_v5, 32  ;;  %v968_v5 = vld [vmem:[#allocation10 + $0x48] sm:$0xff] }
  0xbf   : > { %1472 = vmatpush1.bf16.msra.mxu0 %v1471_v4  ;;  %v2249_v4 = vld [vmem:[%s2349_s7] sm:$0x3f]  ;;  %v2256_v11 = vsel %vm381_vm2, 1.0, %v1900_v0 }
  0xc0   : > { %1497 = vmatprep.subr.bf16.mxu0 %v1901_v1  ;;  %1493 = vmatpush3.bf16.msra.mxu1 %v1492_v9  ;;  %v766_v6 = vrot.slane %v2249_v4, %v438_v17  ;;  %v865_v17 = vld [vmem:[#allocation8 + $0x20] sm:$0xff]  ;;  %v854_v56 = vrot.slane %v2249_v4, %v442_v15  ;;  %v859_v58 = vrot.slane %v2249_v4, %v446_v24  ;;  %v969_v15 = vld [vmem:[#allocation10 + $0x50] sm:$0xff] }
  0xc1   : > { %1494 = vmatprep.subr.bf16.mxu1 %v1901_v1  ;;  %v971_v24 = vld [vmem:[#allocation10 + $0x60] sm:$0xff] }
  0xc2   : > { %516 = vmatmul.mubr.f32.vlgmr.msra.gmra.mrb[0].mxu0 %v2198_v8 }
  0xc3   : > { %1368 = vmatprep.mubr.msk.f32.mxu0 %vm1902_vm0, %v1900_v0  ;;  %1499 = vmatpush3.bf16.msra.mxu0 %v1498_v40  ;;  %v1540_v40 = vpack.c.bf16 %v874_v39, %v873_v38 }
  0xc4   : > { %1496 = vmatpush3.bf16.msra.mxu1 %v1495_v12  ;;  %1500 = vmatprep.subr.bf16.mxu0 %v1901_v1 }
  0xc5   : > { %1326 = vmatprep.subr.mxu1 %v1900_v0 }
  0xc7   : > { %1324 = vmatmul.mubr.f32.vlgmr.msra.gmra.mrb[0].mxu1 %v2198_v8  ;;  %1502 = vmatpush3.bf16.msra.mxu0 %v1501_v42  ;;  %v876_v42 = vld [vmem:[#allocation8 + $0x78] sm:$0xff] }
  0xc8   : > { %1328 = vmatprep.mubr.msk.f32.mxu1 %vm1902_vm0, %v1900_v0  ;;  %1503 = vmatprep.subr.bf16.mxu0 %v1901_v1  ;;  %v1543_v43 = vpack.c.bf16 %v876_v42, %v875_v41  ;;  %v1070_v41 = vsub.s32 5, %v2213_v14 }
  0xcb   : > { %1505 = vmatpush3.bf16.msra.mxu0 %v1504_v45  ;;  %v960_v45 = vld [vmem:[#allocation10 + $0x8] sm:$0xff] }
  0xcc   : > { %1506 = vmatprep.subr.bf16.mxu0 %v1901_v1  ;;  %v1546_v47 = vpack.c.bf16 %v960_v45, %v959_v44  ;;  %v1071_v45 = vrot.slane %v2249_v4, %v1070_v41 }
  0xcf   : > { %1508 = vmatpush3.bf16.msra.mxu0 %v1507_v48  ;;  %v962_v48 = vld [vmem:[#allocation10 + $0x18] sm:$0xff] }
  0xd0   : > { %1509 = vmatprep.subr.bf16.mxu0 %v1901_v1  ;;  %v1549_v49 = vpack.c.bf16 %v962_v48, %v961_v46 }
  0xd3   : > { %1511 = vmatpush3.bf16.msra.mxu0 %v1510_v51  ;;  %v964_v51 = vld [vmem:[#allocation10 + $0x28] sm:$0xff] }
  0xd4   : > { %1512 = vmatprep.subr.bf16.mxu0 %v1901_v1  ;;  %v1552_v52 = vpack.c.bf16 %v964_v51, %v963_v50 }
  0xd7   : > { %1514 = vmatpush3.bf16.msra.mxu0 %v1513_v54 }
  0xd8   : > { %1515 = vmatprep.subr.bf16.mxu0 %v1901_v1 }
  0xdb   : > { %1517 = vmatpush3.bf16.msra.mxu0 %v1516_v57 }
  0xdc   : > { %1518 = vmatprep.subr.bf16.mxu0 %v1901_v1 }
  0xdf   : > { %1520 = vmatpush3.bf16.msra.mxu0 %v1519_v60 }
  0xe0   : > { %1545 = vmatprep.subr.bf16.mxu0 %v1901_v1 }
 0x195   : > { %v517_v19 = vpop.f32.mrb[0].mxu0 }
 0x196   : > { %v519_v21 = vpop.f32.mrb[1].mxu0  ;;  %v518_v23 = vadd.f32 %v517_v19, %v439_v20  ;;  %v862_v19 = vld [vmem:[#allocation8 + $0x8] sm:$0xff]  ;;  %v863_v20 = vld [vmem:[#allocation8 + $0x10] sm:$0xff] }
 0x197   : > { %v520_v22 = vadd.f32 %v519_v21, %v443_v18  ;;  %v861_v18 = vld [vmem:[#allocation8] sm:$0xff]  ;;  %v864_v21 = vld [vmem:[#allocation8 + $0x18] sm:$0xff] }
 0x198   : > { %v1522_v13 = vpack.c.bf16 %v862_v19, %v861_v18  ;;  %v974_v18 = vld [vmem:[#allocation10 + $0x78] sm:$0xff] }
 0x199   : > { %1327 = vmatpush3.xpose.msra.mxu1 %v520_v22  ;;  %v1525_v22 = vpack.c.bf16 %v864_v21, %v863_v20  ;;  %v1214_v20 = vld [vmem:[%s2347_s5] ss:$0 sm:$0xff] }
 0x19a   : > { %1331 = vmatprep.subr.mxu1 %v1900_v0  ;;  %v588_v26 = vpop.f32.mrb[0].mxu1 }
 0x19b   : > { %v589_v27 = vadd.f32 %v588_v26, %v447_v25  ;;  %v1325_v28 = vpop.f32.mrb[1].mxu1 }
 0x19c   : > { %1329 = vmatmul.mubr.f32.vlgmr.msra.gmra.mrb[2].mxu1 %v518_v23  ;;  %v866_v23 = vld [vmem:[#allocation8 + $0x28] sm:$0xff] }
 0x19d   : > { %1333 = vmatprep.mubr.msk.f32.mxu1 %vm1902_vm0, %v1900_v0  ;;  %1332 = vmatpush3.msra.mxu1 %v589_v27  ;;  %v1528_v25 = vpack.c.bf16 %v866_v23, %v865_v17 }
 0x19e   : > { %1521 = vmatprep.subr.bf16.mxu1 %v1901_v1 }
 0x26f   : > { %v658_v29 = vpop.f32.mrb[2].mxu1 }
 0x270   : > { %v1330_v30 = vpop.f32.mrb[3].mxu1  ;;  %v663_v31 = vsel %vm662_vm1, %v658_v29, -inf }
 0x271   : > { %664 = vmax.xlane.f32.xlu0 %v663_v31  ;;  %v868_v30 = vld [vmem:[#allocation8 + $0x38] sm:$0xff] }
 0x2fe   : > { %v665_v32 = vpop.xlane.xlu0 %664 }
 0x2ff   : > { %v666_v33 = vsub.f32 %v658_v29, %v665_v32  ;;  %v867_v29 = vld [vmem:[#allocation8 + $0x30] sm:$0xff]  ;;  %v869_v32 = vld [vmem:[#allocation8 + $0x40] sm:$0xff] }
 0x300   : > { %v1531_v31 = vpack.c.bf16 %v868_v30, %v867_v29 }
 0x301   : > { %v667_v34 = vmul.f32 1.442695, %v666_v33  ;;  %v870_v33 = vld [vmem:[#allocation8 + $0x48] sm:$0xff] }
 0x303   : > { %1663 = vpow2.f32 %v667_v34  ;;  %v1534_v34 = vpack.c.bf16 %v870_v33, %v869_v32 }
 0x30d   : > { %v1664_v35 = vpop.eup %1663 }
 0x30e   : > { %v669_v36 = vsel %vm662_vm1, %v1664_v35, 0.0 }
 0x30f   : > { %670 = vadd.xlane.f32.xlu0 %v669_v36  ;;  %v872_v36 = vld [vmem:[#allocation8 + $0x58] sm:$0xff] }
 0x39c   : > { %v671_v61 = vpop.xlane.xlu0 %670 }
 0x39d   : > { %1665 = vrcp.f32 %v671_v61 }
 0x3a7   : > { %v1666_v62 = vpop.eup %1665 }
 0x3a8   : > { %v673_v63 = vmul.f32 %v1666_v62, %v1664_v35  ;;  %v871_v35 = vld [vmem:[#allocation8 + $0x50] sm:$0xff] }
 0x3a9   : > { %v1537_v37 = vpack.c.bf16 %v872_v36, %v871_v35  ;;  %v965_v62 = vld [vmem:[#allocation10 + $0x30] sm:$0xff] }
 0x3aa   : > { %1334 = vmatmul.mubr.msk.f32.vlgmr.msra.gmra.mrb[4].mxu1 %vm662_vm1, %v673_v63  ;;  %v966_v63 = vld [vmem:[#allocation10 + $0x38] sm:$0xff] }
 0x3ab   : > { %1403 = vmatprep.mubr.msk.f32.mxu1 %vm1902_vm0, %v1900_v0  ;;  %1523 = vmatpush3.bf16.msra.mxu1 %v1522_v13 }
 0x3ac   : > { %1524 = vmatprep.subr.bf16.mxu1 %v1901_v1 }
 0x3af   : > { %1526 = vmatpush3.bf16.msra.mxu1 %v1525_v22 }
 0x3b0   : > { %1527 = vmatprep.subr.bf16.mxu1 %v1901_v1 }
 0x3b3   : > { %1529 = vmatpush3.bf16.msra.mxu1 %v1528_v25 }
 0x3b4   : > { %1530 = vmatprep.subr.bf16.mxu1 %v1901_v1 }
 0x3b7   : > { %1532 = vmatpush3.bf16.msra.mxu1 %v1531_v31 }
 0x3b8   : > { %1533 = vmatprep.subr.bf16.mxu1 %v1901_v1 }
 0x3bb   : > { %1535 = vmatpush3.bf16.msra.mxu1 %v1534_v34 }
 0x3bc   : > { %1536 = vmatprep.subr.bf16.mxu1 %v1901_v1 }
 0x3bf   : > { %1538 = vmatpush3.bf16.msra.mxu1 %v1537_v37 }
 0x3c0   : > { %1539 = vmatprep.subr.bf16.mxu1 %v1901_v1 }
 0x3c3   : > { %1541 = vmatpush3.bf16.msra.mxu1 %v1540_v40  ;;  %v1065_v40 = vsub.s32 4, %v2213_v14 }
 0x3c4   : > { %1542 = vmatprep.subr.bf16.mxu1 %v1901_v1 }
 0x3c5   : > { %v1066_v42 = vrot.slane %v2249_v4, %v1065_v40 }
 0x3c7   : > { %1544 = vmatpush3.bf16.msra.mxu1 %v1543_v43 }
 0x47d   : > { %v743_v2 = vpop.f32.mrb[4].mxu1 }
 0x47e   : > { %v1335_v3 = vpop.f32.mrb[5].mxu1  ;;  %1369 = vmatmul.mubr.f32.vlgmr.msra.gmra.mrb[2].mxu0 %v743_v2  ;;  %v1555_v2 = vpack.c.bf16 %v966_v63, %v965_v62 }
 0x47f   : > { %1438 = vmatprep.mubr.msk.f32.mxu0 %vm1902_vm0, %v1900_v0  ;;  %1547 = vmatpush3.bf16.msra.mxu0 %v1546_v47  ;;  %v967_v3 = vld [vmem:[#allocation10 + $0x40] sm:$0xff] }
 0x480   : > { %1548 = vmatprep.subr.bf16.mxu0 %v1901_v1 }
 0x483   : > { %1550 = vmatpush3.bf16.msra.mxu0 %v1549_v49 }
 0x484   : > { %1551 = vmatprep.subr.bf16.mxu0 %v1901_v1 }
 0x487   : > { %1553 = vmatpush3.bf16.msra.mxu0 %v1552_v52 }
 0x488   : > { %1554 = vmatprep.subr.bf16.mxu0 %v1901_v1 }
 0x48b   : > { %1556 = vmatpush3.bf16.msra.mxu0 %v1555_v2 }
 0x48c   : > { %1557 = vmatprep.subr.bf16.mxu0 %v1901_v1 }
 0x551   : > { %v833_v7 = vpop.f32.mrb[2].mxu0 }
 0x552   : > { %v834_v9 = vadd.f32 %v833_v7, %v766_v6  ;;  %v1370_v10 = vpop.f32.mrb[3].mxu0  ;;  %v1558_v6 = vpack.c.bf16 %v968_v5, %v967_v3  ;;  %v970_v7 = vld [vmem:[#allocation10 + $0x58] sm:$0xff] }
 0x553   : > { %v972_v10 = vld [vmem:[#allocation10 + $0x68] sm:$0xff] }
 0x554   : > { %v837_v12 = vadd.f32 %v834_v9, %v2198_v8  ;;  %1559 = vmatpush3.bf16.msra.mxu0 %v1558_v6  ;;  %v1561_v9 = vpack.c.bf16 %v970_v7, %v969_v15 }
 0x555   : > { %1560 = vmatprep.subr.bf16.mxu0 %v1901_v1 }
 0x556   : > { %v838_v16 = vmul.f32 %v2256_v11, %v837_v12 }
 0x558   : > { %839 = vadd.xlane.f32.xlu1 %v838_v16  ;;  %1562 = vmatpush3.bf16.msra.mxu0 %v1561_v9  ;;  %v973_v16 = vld [vmem:[#allocation10 + $0x70] sm:$0xff] }
 0x559   : > { %1563 = vmatprep.subr.bf16.mxu0 %v1901_v1  ;;  %v1567_v19 = vpack.c.bf16 %v974_v18, %v973_v16 }
 0x5e5   : > { %v840_v0 = vpop.xlane.xlu1 %839 }
 0x5e6   : > { %v841_v8 = vmul.f32 0.03125, %v840_v0 }
 0x5e8   : > { %v842_v26 = vsub.f32 %v837_v12, %v841_v8  ;;  %v1564_v12 = vpack.c.bf16 %v972_v10, %v971_v24 }
 0x5ea   : > { %v843_v27 = vmul.f32 %v2256_v11, %v842_v26  ;;  %1565 = vmatpush3.bf16.msra.mxu0 %v1564_v12 }
 0x5eb   : > { %1566 = vmatprep.subr.bf16.mxu0 %v1901_v1  ;;  %v977_v1 = vsub.s32 3, %v2213_v14 }
 0x5ec   : > { %v844_v28 = vmul.f32 %v843_v27, %v843_v27 }
 0x5ee   : > { %845 = vadd.xlane.f32.xlu1 %v844_v28  ;;  %1568 = vmatpush3.bf16.msra.mxu0 %v1567_v19 }
 0x67b   : > { %v846_v53 = vpop.xlane.xlu1 %845 }
 0x67c   : > { %v847_v54 = vmul.f32 0.03125, %v846_v53 }
 0x67e   : > { %v848_v55 = vadd.f32 1e-05, %v847_v54 }
 0x680   : > { %1667 = vrsqrt.f32 %v848_v55 }
 0x68a   : > { %v1668_v57 = vpop.eup %1667 }
 0x68b   : > { %v850_v59 = vmul.f32 %v1668_v57, %v842_v26  ;;  %v978_v26 = vrot.slane %v2249_v4, %v977_v1 }
 0x68d   : > { %v855_v60 = vmul.f32 %v854_v56, %v850_v59 }
 0x68f   : > { %v860_v61 = vadd.f32 %v859_v58, %v855_v60 }
 0x691   : > { %1404 = vmatmul.mubr.f32.vlgmr.msra.gmra.mrb[6].mxu1 %v860_v61 }
 0x764   : > { %v950_v13 = vpop.f32.mrb[6].mxu1 }
 0x765   : > { %v951_v21 = vadd.f32 %v1214_v20, %v950_v13  ;;  %v1405_v22 = vpop.f32.mrb[7].mxu1 }
 0x767   : > { %v955_v17 = vmul.f32 0.70710677, %v951_v21  ;;  %v954_v25 = vmul.f32 0.5, %v951_v21 }
 0x769   : > { %1669 = verf.f32 %v955_v17 }
 0x773   : > { %v1670_v23 = vpop.eup %1669 }
 0x774   : > { %v957_v0 = vadd.f32 1.0, %v1670_v23 }
 0x776   : > { %v958_v8 = vmul.f32 %v957_v0, %v954_v25 }
 0x778   : > { %1439 = vmatmul.mubr.f32.vlgmr.msra.gmra.mrb[4].mxu0 %v958_v8 }
 0x84b   : > { %v1045_v27 = vpop.f32.mrb[4].mxu0 }
 0x84c   : > { %v1046_v28 = vadd.f32 %v1045_v27, %v978_v26  ;;  %v1440_v29 = vpop.f32.mrb[5].mxu0 }
 0x84e   : > { %v1049_v30 = vadd.f32 %v1046_v28, %v860_v61 }
 0x850   : > { %v1050_v31 = vmul.f32 %v2256_v11, %v1049_v30 }
 0x852   : > { %1051 = vadd.xlane.f32.xlu0 %v1050_v31 }
 0x8df   : > { %v1052_v32 = vpop.xlane.xlu0 %1051 }
 0x8e0   : > { %v1053_v33 = vmul.f32 0.03125, %v1052_v32 }
 0x8e2   : > { %v1054_v34 = vsub.f32 %v1049_v30, %v1053_v33 }
 0x8e4   : > { %v1055_v35 = vmul.f32 %v2256_v11, %v1054_v34 }
 0x8e6   : > { %v1056_v36 = vmul.f32 %v1055_v35, %v1055_v35 }
 0x8e8   : > { %1057 = vadd.xlane.f32.xlu1 %v1056_v36 }
 0x975   : > { %v1058_v37 = vpop.xlane.xlu1 %1057 }
 0x976   : > { %v1059_v38 = vmul.f32 0.03125, %v1058_v37 }
 0x978   : > { %v1060_v39 = vadd.f32 1e-05, %v1059_v38 }
 0x97a   : > { %1671 = vrsqrt.f32 %v1060_v39 }
 0x984   : > { %v1672_v43 = vpop.eup %1671 }
 0x985   : > { %v1062_v44 = vmul.f32 %v1672_v43, %v1054_v34 }
 0x987   : > { %v1067_v11 = vmul.f32 %v1066_v42, %v1062_v44 }
 0x989   : > { %v1072_v46 = vadd.f32 %v1071_v45, %v1067_v11 }
 0x98b   : > { %1073 = vst [vmem:[%s378_s16] sm:$0xff] %v1072_v46 }
 0x98c   : > { %1828 = shalt.err (!%p1825_p12)
}
 0x98d   : > { %s1829_s1 = scalar_lea.hbm %s2298_s17, 128  ;;  %s1833_s20 = scalar_lea.hbm %s2350_s8, 256 }
 0x98e   : > { %p1830_p13 = scmp.ne.s32.totalorder %s2298_s17, %s1829_s1  ;;  %p1834_p9 = scmp.lt.u32.totalorder %s2298_s17, %s2350_s8 }
 0x98f   : > { %p1835_p4 = scmp.lt.u32.totalorder %s1833_s20, %s1829_s1  ;;  %p1837_p6 = scmp.lt.u32.totalorder %s1829_s1, %s2298_s17 }
 0x990   : > { %p1831_p3 = pnand %p1830_p13, %p2370_p0 }
 0x991   : > { %p1836_p8 = por %p1835_p4, %p1834_p9 }
 0x992   : > { %p1832_p7 = pneg %p1831_p3 }
 0x993   : > { %p1838_p2 = por %p1837_p6, %p1836_p8 }
 0x995   : > { %p1839_p5 = pnand %p1838_p2, %p1832_p7 }
 0x997   : > { %1842 = shalt.err (!%p1839_p5)
}
 0x998   : > { %1587 = dma.vmem_to_hbm [thread:$0]  (%p2370_p0), %s2300_s25, 128, %s2298_s17, %s1075_s12  }
 0x999 PF: > { %s1100_s26 = sand.u32 1, %s1877_s27   ;;  %p2371_p10 = scmp.ne.s32.totalorder %s2363_s24, 0 }
 0x99a   : > { %p2372_p1 = scmp.ge.s32.totalorder %s1889_s30, 2  ;;  %s1101_s22 = scalar_lea.sflag [#allocation4], %s1100_s26 }
 0x99c   : > { %p1607_p11 = pnand %p2372_p1, %p2371_p10 }
 0x99e   : > { %1872 = dma.done.wait (!%p1607_p11), %s1101_s22, 128  }
 0x99f   : > { %1874 = vsyncadd (!%p1607_p11), %s1101_s22, 4294967168  ;;  %p23_p12 = scmp.ge.s32.totalorder %s2094_s23, 4   ;;  %s2373_s27 = smov %s1881_s28 }
 0x9a0   : > { %s2374_s28 = smov %s1885_s29  ;;  %s2375_s29 = smov %s2105_s21 }
 0x9a1   : > { %s2376_s30 = smov %s2094_s23  ;;  %25 = sbr.rel (!%p23_p12) target bundleno = 9 (0x9), region = 113 }
 0x9a8   :  { %1106 = vsyncpa [#allocation3], 1 }
 0x9a9   :  { %1108 = vsyncpa [#allocation3 + $0x1], 1 }
 0x9aa   :  { %1109 = vsyncpa [#allocation6], 1 }
 0x9ab   :  { %1110 = vsyncpa [#allocation9], 1 }
 0x9ac   :  { %1111 = vsyncpa [#allocation4], 1 }
 0x9ad   :  { %1113 = vsyncpa [#allocation4 + $0x1], 1 }

</bundles_post_ra>
